<compile_context>
chip_gen: v6e
topology: v6e:2x2x1
jax: 0.10.0
libtpu: 0.0.40
codegen_flags: <defaults>
</compile_context>

<pallas_src>
import functools

import jax
import jax.numpy as jnp
from jax.experimental import pallas as pl
from jax.experimental.pallas import tpu as pltpu

_LANES = 128
_SUBLANES = 8


def _fcnn_probe_kernel(num_deep, o_pad,
                       z_ref, w0_ref, b0_ref, wh_ref, bh_ref, wo_ref, bo_ref,
                       out_ref):
    """One batch tile of the MLP probe.

    out_ref is a lane-dense (TB, 2*o_pad) slab:
      out_ref[:, :o_pad]  = logits      (feature dim zero-padded to o_pad)
      out_ref[:, o_pad:]  = sigmoid(logits)
    """
    hp = jax.lax.Precision.HIGHEST

    # fc0 + ReLU  (MXU matmul, f32 accumulate)
    c = jnp.dot(z_ref[...], w0_ref[...],
                preferred_element_type=jnp.float32, precision=hp)
    c = jnp.maximum(c + b0_ref[...], 0.0)

    # hidden layers (static unroll; num_deep is a Python int)
    for d in range(num_deep):
        c = jnp.dot(c, wh_ref[d],
                    preferred_element_type=jnp.float32, precision=hp)
        c = jnp.maximum(c + bh_ref[d], 0.0)

    # output layer (no ReLU) + sigmoid head (exp/recip run on the EUP slot)
    logits = jnp.dot(c, wo_ref[...],
                     preferred_element_type=jnp.float32, precision=hp)
    logits = logits + bo_ref[...]
    probs = jax.nn.sigmoid(logits)

    # Two lane-aligned (multiple-of-128) unmasked stores.
    out_ref[:, :o_pad] = logits.astype(out_ref.dtype)
    out_ref[:, o_pad:] = probs.astype(out_ref.dtype)


def fcnn_probe_forward(z, params, *, block_batch=None):
    """Runs the FCNNProbe forward pass. Returns (logits, sigmoid(logits))."""
    w0, b0, wh, bh, wo, bo = params
    num_deep = wh.shape[0]
    num_hidden = w0.shape[1]
    batch, num_inputs = z.shape
    num_outputs = wo.shape[1]

    # ---- lane-dense output: pad the output feature dim to 128 lanes --------
    o_pad = pl.cdiv(num_outputs, _LANES) * _LANES
    if o_pad != num_outputs:
        wo = jnp.pad(wo, ((0, 0), (0, o_pad - num_outputs)))
        bo = jnp.pad(bo, ((0, 0), (0, o_pad - num_outputs)))

    # ---- batch tile (pipelined grid axis) -----------------------------------
    if block_batch is None:
        block_batch = min(512, batch)                 # roofline-friendly tile
    block_batch = max(_SUBLANES, (block_batch // _SUBLANES) * _SUBLANES)
    padded_batch = pl.cdiv(batch, block_batch) * block_batch
    if padded_batch != batch:
        z = jnp.pad(z, ((0, padded_batch - batch), (0, 0)))
    grid = (padded_batch // block_batch,)

    # ---- explicit VMEM budget (double-buffered I/O + resident weights) -----
    f32 = 4
    weight_bytes = (w0.size + b0.size + wh.size + bh.size + wo.size + bo.size) * f32
    io_bytes = (block_batch * num_inputs + block_batch * 2 * o_pad) * f32
    act_bytes = block_batch * max(num_hidden, 2 * o_pad) * f32
    vmem_limit = int(min(2 * (weight_bytes + io_bytes) + 4 * act_bytes + (4 << 20),
                         64 << 20))                   # stay within v7x 64 MiB/TC

    # ---- cost estimate for XLA scheduling -----------------------------------
    flops = 2 * padded_batch * (num_inputs * num_hidden
                                + num_deep * num_hidden * num_hidden
                                + num_hidden * o_pad)
    bytes_accessed = (padded_batch * num_inputs + padded_batch * 2 * o_pad) * f32 \
        + weight_bytes
    cost = pl.CostEstimate(flops=flops,
                           transcendentals=padded_batch * o_pad,
                           bytes_accessed=bytes_accessed)

    kernel = functools.partial(_fcnn_probe_kernel, num_deep, o_pad)

    in_specs = [
        pl.BlockSpec((block_batch, num_inputs), lambda i: (i, 0)),   # z (tiled)
        pl.BlockSpec(w0.shape, lambda i: (0, 0)),                    # w0 resident
        pl.BlockSpec(b0.shape, lambda i: (0, 0)),                    # b0 resident
        pl.BlockSpec(wh.shape, lambda i: (0, 0, 0)),                 # wh resident
        pl.BlockSpec(bh.shape, lambda i: (0, 0, 0)),                 # bh resident
        pl.BlockSpec(wo.shape, lambda i: (0, 0)),                    # wo resident
        pl.BlockSpec(bo.shape, lambda i: (0, 0)),                    # bo resident
    ]
    out_spec = pl.BlockSpec((block_batch, 2 * o_pad), lambda i: (i, 0))

    packed = pl.pallas_call(
        kernel,
        out_shape=jax.ShapeDtypeStruct((padded_batch, 2 * o_pad), jnp.float32),
        grid=grid,
        in_specs=in_specs,
        out_specs=out_spec,
        cost_estimate=cost,
        compiler_params=pltpu.CompilerParams(
            dimension_semantics=("parallel",),
            vmem_limit_bytes=vmem_limit),
    )(z, w0, b0, wh, bh, wo, bo)

    logits = packed[:batch, :num_outputs]
    probs = packed[:batch, o_pad:o_pad + num_outputs]
    return logits, probs


def init_fcnn_probe_params(key, num_inputs, num_outputs, num_hidden, num_deep):
    """Deterministic init mirroring nn.Linear's uniform(-1/sqrt(fan_in), +) init.

    Weights are stored transposed: (in_features, out_features).
    Biases are stored as (1, out_features) (hidden biases: (num_deep, 1, H)).
    """
    ks = jax.random.split(key, 6)

    def uinit(k, shape, fan_in):
        bound = 1.0 / jnp.sqrt(jnp.float32(fan_in))
        return jax.random.uniform(k, shape, jnp.float32, -bound, bound)

    w0 = uinit(ks[0], (num_inputs, num_hidden), num_inputs)
    b0 = uinit(ks[1], (1, num_hidden), num_inputs)
    wh = uinit(ks[2], (num_deep, num_hidden, num_hidden), num_hidden)
    bh = uinit(ks[3], (num_deep, 1, num_hidden), num_hidden)
    wo = uinit(ks[4], (num_hidden, num_outputs), num_hidden)
    bo = uinit(ks[5], (1, num_outputs), num_hidden)
    return (w0, b0, wh, bh, wo, bo)


def fcnn_probe_reference(z, params):
    """Pure-JAX reference of the PyTorch forward for correctness checking."""
    w0, b0, wh, bh, wo, bo = params
    hp = jax.lax.Precision.HIGHEST
    c = jax.nn.relu(jnp.dot(z, w0, precision=hp) + b0)
    for d in range(wh.shape[0]):
        c = jax.nn.relu(jnp.dot(c, wh[d], precision=hp) + bh[d])
    logits = jnp.dot(c, wo, precision=hp) + bo
    return logits, jax.nn.sigmoid(logits)


if __name__ == "__main__":
    # Small shapes consistent with the module's forward: z is (batch, num_inputs).
    batch = 8
    num_inputs = 32
    num_hidden = 32
    num_outputs = 4
    num_deep = 2

    key = jax.random.PRNGKey(0)
    k_z, k_p = jax.random.split(key)
    z = jax.random.normal(k_z, (batch, num_inputs), jnp.float32)
    params = init_fcnn_probe_params(k_p, num_inputs, num_outputs, num_hidden, num_deep)

    logits, probs = fcnn_probe_forward(z, params)
    jax.block_until_ready((logits, probs))

    ref_logits, ref_probs = fcnn_probe_reference(z, params)
    assert logits.shape == ref_logits.shape and probs.shape == ref_probs.shape
    assert jnp.allclose(logits, ref_logits, atol=1e-5, rtol=1e-5)
    assert jnp.allclose(probs, ref_probs, atol=1e-5, rtol=1e-5)

    print("KERNEL_OK")
</pallas_src>

<mosaic_0001>
module attributes {stable_mosaic.version = 11 : i64} {
  func.func @_fcnn_probe_kernel(%arg0: i32, %arg1: memref<8x32xf32, #tpu.memory_space<vmem>>, %arg2: memref<32x32xf32, #tpu.memory_space<vmem>>, %arg3: memref<1x32xf32, #tpu.memory_space<vmem>>, %arg4: memref<2x32x32xf32, #tpu.memory_space<vmem>>, %arg5: memref<2x1x32xf32, #tpu.memory_space<vmem>>, %arg6: memref<32x128xf32, #tpu.memory_space<vmem>>, %arg7: memref<1x128xf32, #tpu.memory_space<vmem>>, %arg8: memref<8x256xf32, #tpu.memory_space<vmem>>) attributes {dimension_semantics = [#tpu.dimension_semantics<parallel>], iteration_bounds = array<i64: 1>, scalar_prefetch = 0 : i64, scratch_operands = 0 : i64, tpu.core_type = #tpu.core_type<tc>, window_params = [{transform_indices = @transform_0, window_bounds = array<i64: 8, 32>}, {pipeline_mode = #tpu.pipeline_mode<synchronous>, transform_indices = @transform_1, window_bounds = array<i64: 32, 32>}, {pipeline_mode = #tpu.pipeline_mode<synchronous>, transform_indices = @transform_2, window_bounds = array<i64: 1, 32>}, {pipeline_mode = #tpu.pipeline_mode<synchronous>, transform_indices = @transform_3, window_bounds = array<i64: 2, 32, 32>}, {pipeline_mode = #tpu.pipeline_mode<synchronous>, transform_indices = @transform_4, window_bounds = array<i64: 2, 1, 32>}, {pipeline_mode = #tpu.pipeline_mode<synchronous>, transform_indices = @transform_5, window_bounds = array<i64: 32, 128>}, {pipeline_mode = #tpu.pipeline_mode<synchronous>, transform_indices = @transform_6, window_bounds = array<i64: 1, 128>}, {transform_indices = @transform_7, window_bounds = array<i64: 8, 256>}]} {
    %c0 = arith.constant 0 : index
    %c0_0 = arith.constant 0 : index
    %0 = vector.load %arg1[%c0, %c0_0] : memref<8x32xf32, #tpu.memory_space<vmem>>, vector<8x32xf32>
    %c0_1 = arith.constant 0 : index
    %c0_2 = arith.constant 0 : index
    %1 = vector.load %arg2[%c0_1, %c0_2] : memref<32x32xf32, #tpu.memory_space<vmem>>, vector<32x32xf32>
    %cst = arith.constant dense<0.000000e+00> : vector<8x32xf32>
    %2 = tpu.matmul %0, %1, %cst {dimension_numbers = #tpu.dot_dimension_numbers<[1], [0], [0], [1], [0, 0, 1, 1], [], []>, precision = #tpu.contract_precision<fp32>} : vector<8x32xf32>, vector<32x32xf32>, vector<8x32xf32> -> vector<8x32xf32>
    %c0_3 = arith.constant 0 : index
    %c0_4 = arith.constant 0 : index
    %3 = vector.load %arg3[%c0_3, %c0_4] : memref<1x32xf32, #tpu.memory_space<vmem>>, vector<1x32xf32>
    %4 = vector.broadcast %3 : vector<1x32xf32> to vector<8x32xf32>
    %5 = arith.addf %2, %4 : vector<8x32xf32>
    %cst_5 = arith.constant 0.000000e+00 : f32
    %6 = vector.broadcast %cst_5 : f32 to vector<8x32xf32>
    %7 = arith.maximumf %5, %6 : vector<8x32xf32>
    %c0_6 = arith.constant 0 : index
    %c0_7 = arith.constant 0 : index
    %c0_8 = arith.constant 0 : index
    %8 = vector.load %arg4[%c0_6, %c0_7, %c0_8] : memref<2x32x32xf32, #tpu.memory_space<vmem>>, vector<1x32x32xf32>
    %9 = vector.shape_cast %8 : vector<1x32x32xf32> to vector<32x32xf32>
    %cst_9 = arith.constant dense<0.000000e+00> : vector<8x32xf32>
    %10 = tpu.matmul %7, %9, %cst_9 {dimension_numbers = #tpu.dot_dimension_numbers<[1], [0], [0], [1], [0, 0, 1, 1], [], []>, precision = #tpu.contract_precision<fp32>} : vector<8x32xf32>, vector<32x32xf32>, vector<8x32xf32> -> vector<8x32xf32>
    %c0_10 = arith.constant 0 : index
    %c0_11 = arith.constant 0 : index
    %c0_12 = arith.constant 0 : index
    %11 = vector.load %arg5[%c0_10, %c0_11, %c0_12] : memref<2x1x32xf32, #tpu.memory_space<vmem>>, vector<1x1x32xf32>
    %12 = vector.shape_cast %11 : vector<1x1x32xf32> to vector<1x32xf32>
    %13 = vector.broadcast %12 : vector<1x32xf32> to vector<8x32xf32>
    %14 = arith.addf %10, %13 : vector<8x32xf32>
    %cst_13 = arith.constant 0.000000e+00 : f32
    %15 = vector.broadcast %cst_13 : f32 to vector<8x32xf32>
    %16 = arith.maximumf %14, %15 : vector<8x32xf32>
    %c1 = arith.constant 1 : index
    %c0_14 = arith.constant 0 : index
    %c0_15 = arith.constant 0 : index
    %17 = vector.load %arg4[%c1, %c0_14, %c0_15] : memref<2x32x32xf32, #tpu.memory_space<vmem>>, vector<1x32x32xf32>
    %18 = vector.shape_cast %17 : vector<1x32x32xf32> to vector<32x32xf32>
    %cst_16 = arith.constant dense<0.000000e+00> : vector<8x32xf32>
    %19 = tpu.matmul %16, %18, %cst_16 {dimension_numbers = #tpu.dot_dimension_numbers<[1], [0], [0], [1], [0, 0, 1, 1], [], []>, precision = #tpu.contract_precision<fp32>} : vector<8x32xf32>, vector<32x32xf32>, vector<8x32xf32> -> vector<8x32xf32>
    %c1_17 = arith.constant 1 : index
    %c0_18 = arith.constant 0 : index
    %c0_19 = arith.constant 0 : index
    %20 = vector.load %arg5[%c1_17, %c0_18, %c0_19] : memref<2x1x32xf32, #tpu.memory_space<vmem>>, vector<1x1x32xf32>
    %21 = vector.shape_cast %20 : vector<1x1x32xf32> to vector<1x32xf32>
    %22 = vector.broadcast %21 : vector<1x32xf32> to vector<8x32xf32>
    %23 = arith.addf %19, %22 : vector<8x32xf32>
    %cst_20 = arith.constant 0.000000e+00 : f32
    %24 = vector.broadcast %cst_20 : f32 to vector<8x32xf32>
    %25 = arith.maximumf %23, %24 : vector<8x32xf32>
    %c0_21 = arith.constant 0 : index
    %c0_22 = arith.constant 0 : index
    %26 = vector.load %arg6[%c0_21, %c0_22] : memref<32x128xf32, #tpu.memory_space<vmem>>, vector<32x128xf32>
    %cst_23 = arith.constant dense<0.000000e+00> : vector<8x128xf32>
    %27 = tpu.matmul %25, %26, %cst_23 {dimension_numbers = #tpu.dot_dimension_numbers<[1], [0], [0], [1], [0, 0, 1, 1], [], []>, precision = #tpu.contract_precision<fp32>} : vector<8x32xf32>, vector<32x128xf32>, vector<8x128xf32> -> vector<8x128xf32>
    %c0_24 = arith.constant 0 : index
    %c0_25 = arith.constant 0 : index
    %28 = vector.load %arg7[%c0_24, %c0_25] : memref<1x128xf32, #tpu.memory_space<vmem>>, vector<1x128xf32>
    %29 = vector.broadcast %28 : vector<1x128xf32> to vector<8x128xf32>
    %30 = arith.addf %27, %29 : vector<8x128xf32>
    %31 = arith.negf %30 : vector<8x128xf32>
    %32 = math.exp %31 : vector<8x128xf32>
    %cst_26 = arith.constant 1.000000e+00 : f32
    %33 = vector.broadcast %cst_26 : f32 to vector<8x128xf32>
    %34 = arith.addf %33, %32 : vector<8x128xf32>
    %35 = arith.divf %33, %34 : vector<8x128xf32>
    %c0_27 = arith.constant 0 : index
    %c0_28 = arith.constant 0 : index
    %36 = vector.load %arg8[%c0_27, %c0_28] : memref<8x256xf32, #tpu.memory_space<vmem>>, vector<8x128xf32>
    tpu.vector_store %arg8[%c0_27, %c0_28], %30 {strides = array<i32>} : memref<8x256xf32, #tpu.memory_space<vmem>>, vector<8x128xf32>,
    %c0_29 = arith.constant 0 : index
    %c128 = arith.constant 128 : index
    %37 = vector.load %arg8[%c0_29, %c128] : memref<8x256xf32, #tpu.memory_space<vmem>>, vector<8x128xf32>
    tpu.vector_store %arg8[%c0_29, %c128], %35 {strides = array<i32>} : memref<8x256xf32, #tpu.memory_space<vmem>>, vector<8x128xf32>,
    return
  }
  func.func @transform_0(%arg0: i32) -> (i32, i32) {
    %c0_i32 = arith.constant 0 : i32
    %c0_i32_0 = arith.constant 0 : i32
    return %arg0, %c0_i32 : i32, i32
  }
  func.func @transform_1(%arg0: i32) -> (i32, i32) {
    %c0_i32 = arith.constant 0 : i32
    %c0_i32_0 = arith.constant 0 : i32
    %c0_i32_1 = arith.constant 0 : i32
    return %c0_i32, %c0_i32_0 : i32, i32
  }
  func.func @transform_2(%arg0: i32) -> (i32, i32) {
    %c0_i32 = arith.constant 0 : i32
    %c0_i32_0 = arith.constant 0 : i32
    %c0_i32_1 = arith.constant 0 : i32
    return %c0_i32, %c0_i32_0 : i32, i32
  }
  func.func @transform_3(%arg0: i32) -> (i32, i32, i32) {
    %c0_i32 = arith.constant 0 : i32
    %c0_i32_0 = arith.constant 0 : i32
    %c0_i32_1 = arith.constant 0 : i32
    %c0_i32_2 = arith.constant 0 : i32
    return %c0_i32, %c0_i32_0, %c0_i32_1 : i32, i32, i32
  }
  func.func @transform_4(%arg0: i32) -> (i32, i32, i32) {
    %c0_i32 = arith.constant 0 : i32
    %c0_i32_0 = arith.constant 0 : i32
    %c0_i32_1 = arith.constant 0 : i32
    %c0_i32_2 = arith.constant 0 : i32
    return %c0_i32, %c0_i32_0, %c0_i32_1 : i32, i32, i32
  }
  func.func @transform_5(%arg0: i32) -> (i32, i32) {
    %c0_i32 = arith.constant 0 : i32
    %c0_i32_0 = arith.constant 0 : i32
    %c0_i32_1 = arith.constant 0 : i32
    return %c0_i32, %c0_i32_0 : i32, i32
  }
  func.func @transform_6(%arg0: i32) -> (i32, i32) {
    %c0_i32 = arith.constant 0 : i32
    %c0_i32_0 = arith.constant 0 : i32
    %c0_i32_1 = arith.constant 0 : i32
    return %c0_i32, %c0_i32_0 : i32, i32
  }
  func.func @transform_7(%arg0: i32) -> (i32, i32) {
    %c0_i32 = arith.constant 0 : i32
    %c0_i32_0 = arith.constant 0 : i32
    return %arg0, %c0_i32 : i32, i32
  }
}

</mosaic_0001>

<bundles_post_ra>
// kernel: tpu_custom_call.1
= control target key start
LH: loop header
LB: loop body
LE: loop exit
PB: predicated region body
PF: predicated region fallthrough
CT: control target
= control target key end

     0   :  { %12 = vsyncpa [#allocation3], 0  ;;  %s3062_s0 = inlined_call_operand.hbm [shape: f32[8,32], index: 0, kind: input, shape index: {}]   ;;  %s3063_s1 = inlined_call_operand.hbm [shape: f32[32,32], index: 1, kind: input, shape index: {}]   ;;  %s3064_s2 = inlined_call_operand.vmem [shape: f32[1,32], index: 2, kind: input, shape index: {}]   ;;  %s3065_s3 = inlined_call_operand.hbm [shape: f32[2,32,32], index: 3, kind: input, shape index: {}]   ;;  %s3066_s4 = inlined_call_operand.vmem [shape: f32[2,1,32], index: 4, kind: input, shape index: {}]   ;;  %s3067_s5 = inlined_call_operand.hbm [shape: f32[32,128], index: 5, kind: input, shape index: {}]   ;;  %s3068_s6 = inlined_call_operand.vmem [shape: f32[1,128], index: 6, kind: input, shape index: {}]   ;;  %s3069_s7 = inlined_call_operand.hbm [shape: f32[8,256], index: 7, kind: output, shape index: {}]  }
   0x1   :  { %13 = vsyncpa [#allocation6], 0 }
   0x2   :  { %14 = vsyncpa [#allocation9], 0 }
   0x3   :  { %15 = vsyncpa [#allocation4], 0  ;;  %s2619_s24 = smov [#allocation5]  }
   0x4   :  { %s31_s25 = sshll.u32 %s2619_s24, 4  ;;  %s32_s25 = int_to_ptr.vmem [resolvable:$true] %s31_s25 }
   0x5   :  { %s2519_s26 = scalar_lea.vmem %s32_s25, 512  ;;  %p2524_p1 = scmp.lt.s32.totalorder %s32_s25, %s32_s25 }
   0x6   :  { %p2520_p0 = scmp.ne.s32.totalorder %s32_s25, %s2519_s26  ;;  %p2525_p2 = scmp.lt.s32.totalorder %s2519_s26, %s2519_s26 }
   0x8   :  { %p2526_p3 = por %p2525_p2, %p2524_p1 }
   0xa   :  { %p2527_p4 = pnand %p2526_p3, %p2520_p0 }
   0xc   :  { %2530 = shalt.err (!%p2527_p4)
}
   0xd   :  { %s2620_s27 = smov 128   ;;  %s2621_s28 = smov 8  }
   0xe   :  { %37 = dma.hbm_to_vmem [thread:$0]  %s3063_s1, 512, %s32_s25, [#allocation6], %s2620_s27, %s2620_s27, %s2621_s28  }
   0xf   :  { %s2622_s8 = smov [#allocation2]   ;;  %s2623_s10 = smov [#allocation7]  }
  0x10   :  { %s22_s9 = sshll.u32 %s2622_s8, 4  ;;  %s45_s11 = sshll.u32 %s2623_s10, 4  ;;  %s23_s9 = int_to_ptr.vmem [resolvable:$true] %s22_s9  ;;  %s46_s11 = int_to_ptr.vmem [resolvable:$true] %s45_s11 }
  0x11   :  { %s2539_s12 = scalar_lea.vmem %s23_s9, 128  ;;  %p2544_p6 = scmp.lt.s32.totalorder %s23_s9, %s23_s9 }
  0x12   :  { %p2540_p5 = scmp.ne.s32.totalorder %s23_s9, %s2539_s12  ;;  %p2545_p7 = scmp.lt.s32.totalorder %s2539_s12, %s2539_s12 }
  0x14   :  { %p2546_p8 = por %p2545_p7, %p2544_p6 }
  0x16   :  { %p2547_p9 = pnand %p2546_p8, %p2540_p5 }
  0x18   :  { %2550 = shalt.err (!%p2547_p9)
}
  0x19   :  { %25 = dma.hbm_to_vmem [thread:$0]  %s3062_s0, 128, %s23_s9, [#allocation3]  }
  0x1a   :  { %s2559_s15 = scalar_lea.vmem %s46_s11, 1024  ;;  %p2564_p11 = scmp.lt.s32.totalorder %s46_s11, %s46_s11 }
  0x1b   :  { %p2560_p10 = scmp.ne.s32.totalorder %s46_s11, %s2559_s15  ;;  %p2565_p12 = scmp.lt.s32.totalorder %s2559_s15, %s2559_s15 }
  0x1d   :  { %p2566_p13 = por %p2565_p12, %p2564_p11 }
  0x1f   :  { %p2567_p0 = pnand %p2566_p13, %p2560_p10 }
  0x21   :  { %2570 = shalt.err (!%p2567_p0)
}
  0x22   :  { %51 = dma.hbm_to_vmem [thread:$0]  %s3065_s3, 1024, %s46_s11, [#allocation6], %s2620_s27, %s2620_s27, %s2621_s28  }
  0x23   :  { %s2624_s17 = smov [#allocation8]  }
  0x24   :  { %s59_s18 = sshll.u32 %s2624_s17, 4  ;;  %s60_s18 = int_to_ptr.vmem [resolvable:$true] %s59_s18 }
  0x25   :  { %s2579_s19 = scalar_lea.vmem %s60_s18, 512  ;;  %p2584_p2 = scmp.lt.s32.totalorder %s60_s18, %s60_s18 }
  0x26   :  { %p2580_p1 = scmp.ne.s32.totalorder %s60_s18, %s2579_s19  ;;  %p2585_p3 = scmp.lt.s32.totalorder %s2579_s19, %s2579_s19 }
  0x28   :  { %p2586_p4 = por %p2585_p3, %p2584_p2 }
  0x2a   :  { %p2587_p5 = pnand %p2586_p4, %p2580_p1 }
  0x2c   :  { %2590 = shalt.err (!%p2587_p5)
}
  0x2d   :  { %65 = dma.hbm_to_vmem [thread:$0]  %s3067_s5, 512, %s60_s18, [#allocation9], %s2620_s27, %s2620_s27, %s2621_s28  }
  0x2e   :  { %2611 = dma.done.wait [#allocation3], 128  }
  0x2f   :  { %2612 = vsyncadd [#allocation3], 4294967168 }
  0x30   :  { %2613 = dma.done.wait [#allocation6], 1536  }
  0x31   :  { %2614 = vsyncadd [#allocation6], 4294965760 }
  0x32   :  { %2615 = dma.done.wait [#allocation9], 512  }
  0x33   :  { %2616 = vsyncadd [#allocation9], 4294966784  ;;  %v2625_v0 = vmov 0.0   ;;  %vm2626_vm0 = vmmov 0   ;;  %vm92_vm1 = vcmask 261120   ;;  %v84_v1 = vld [vmem:[#allocation5 + $0x18] sm:$0xff] }
  0x34   :  { %2234 = vmatprep.subr.mxu0 %v2625_v0  ;;  %2245 = vmatprep.subr.mxu1 %v2625_v0  ;;  %v83_v2 = vld [vmem:[#allocation5 + $0x10] sm:$0xff]  ;;  %v82_v3 = vld [vmem:[#allocation5 + $0x8] sm:$0xff]  ;;  %v2695_v4 = vand.u32 4294901760, %v84_v1  ;;  %v81_v7 = vld [vmem:[#allocation5] sm:$0xff]  ;;  %s2627_s25 = smov [#allocation10]  }
  0x35   :  { %2242 = vmatprep.mubr.msk.f32.mxu0 %vm2626_vm0, %v2625_v0  ;;  %2253 = vmatprep.mubr.msk.f32.mxu1 %vm2626_vm0, %v2625_v0  ;;  %v2697_v5 = vand.u32 4294901760, %v83_v2  ;;  %v2699_v6 = vand.u32 4294901760, %v82_v3  ;;  %v80_v8 = vld [vmem:[#allocation2] sm:$0xff]  ;;  %v2701_v9 = vand.u32 4294901760, %v81_v7  ;;  %v584_v34 = vld [vmem:[#allocation7 + $0x10] sm:$0xff]  ;;  %v583_v37 = vld [vmem:[#allocation7 + $0x8] sm:$0xff] }
  0x36   :  { %v94_v10 = vsel %vm92_vm1, %v80_v8, 0  ;;  %2235 = vmatpush3.msra.mxu0 %v2695_v4  ;;  %v201_v11 = vsub.f32 %v84_v1, %v2695_v4  ;;  %v585_v32 = vld [vmem:[#allocation7 + $0x18] sm:$0xff]  ;;  %v2767_v36 = vand.u32 4294901760, %v584_v34  ;;  %v2775_v40 = vand.u32 4294901760, %v583_v37  ;;  %v582_v41 = vld [vmem:[#allocation7] sm:$0xff] }
  0x37   :  { %v2706_v12 = vand.u32 4294901760, %v94_v10  ;;  %v208_v13 = vsub.f32 %v83_v2, %v2697_v5  ;;  %v215_v14 = vsub.f32 %v82_v3, %v2699_v6  ;;  %2236 = vmatprep.subr.mxu0 %v2625_v0  ;;  %v222_v15 = vsub.f32 %v81_v7, %v2701_v9  ;;  %v2108_v59 = vld [vmem:[%s3064_s2] ss:$0 sm:$0xff] }
  0x38   :  { %2237 = vmatpush3.msra.mxu0 %v2697_v5  ;;  %v202_v16 = vand.u32 4294901760, %v201_v11  ;;  %v2762_v33 = vand.u32 4294901760, %v585_v32  ;;  %v2773_v39 = vsub.f32 %v584_v34, %v2767_v36  ;;  %v2784_v44 = vsub.f32 %v583_v37, %v2775_v40 }
  0x39   :  { %v166_v17 = vsub.f32 %v94_v10, %v2706_v12  ;;  %v209_v18 = vand.u32 4294901760, %v208_v13  ;;  %v216_v19 = vand.u32 4294901760, %v215_v14  ;;  %2238 = vmatprep.subr.mxu0 %v2625_v0  ;;  %v223_v20 = vand.u32 4294901760, %v222_v15 }
  0x3a   :  { %2239 = vmatpush3.msra.mxu0 %v2699_v6  ;;  %v203_v21 = vsub.f32 %v201_v11, %v202_v16  ;;  %v2765_v35 = vsub.f32 %v585_v32, %v2762_v33  ;;  %v709_v43 = vand.u32 4294901760, %v2773_v39  ;;  %v2786_v45 = vand.u32 4294901760, %v582_v41 }
  0x3b   :  { %v167_v22 = vand.u32 4294901760, %v166_v17  ;;  %v210_v23 = vsub.f32 %v208_v13, %v209_v18  ;;  %v217_v24 = vsub.f32 %v215_v14, %v216_v19  ;;  %2240 = vmatprep.subr.mxu0 %v2625_v0  ;;  %v224_v28 = vsub.f32 %v222_v15, %v223_v20 }
  0x3c   :  { %2241 = vmatpush3.msra.mxu0 %v2701_v9  ;;  %v204_v25 = vand.u32 4294901760, %v203_v21  ;;  %v702_v38 = vand.u32 4294901760, %v2765_v35  ;;  %v710_v47 = vsub.f32 %v2773_v39, %v709_v43  ;;  %v716_v48 = vand.u32 4294901760, %v2784_v44  ;;  %v1085_v21 = vld [vmem:[#allocation7 + $0x30] sm:$0xff] }
  0x3d   :  { %v168_v26 = vsub.f32 %v166_v17, %v167_v22  ;;  %v211_v27 = vand.u32 4294901760, %v210_v23  ;;  %2256 = vmatprep.subr.mxu0 %v2625_v0  ;;  %v218_v30 = vand.u32 4294901760, %v217_v24  ;;  %v225_v31 = vand.u32 4294901760, %v224_v28  ;;  %v1084_v24 = vld [vmem:[#allocation7 + $0x28] sm:$0xff]  ;;  %v1083_v28 = vld [vmem:[#allocation7 + $0x20] sm:$0xff] }
  0x3e   :  { %2246 = vmatpush3.msra.mxu1 %v204_v25  ;;  %v703_v42 = vsub.f32 %v2765_v35, %v702_v38  ;;  %v2795_v49 = vsub.f32 %v582_v41, %v2786_v45  ;;  %v711_v50 = vand.u32 4294901760, %v710_v47  ;;  %v717_v51 = vsub.f32 %v2784_v44, %v716_v48 }
  0x3f   :  { %v169_v29 = vand.u32 4294901760, %v168_v26  ;;  %2247 = vmatprep.subr.mxu1 %v2625_v0  ;;  %v2867_v23 = vand.u32 4294901760, %v1085_v21  ;;  %v2886_v32 = vand.u32 4294901760, %v1083_v28 }
  0x40   :  { %2248 = vmatpush3.msra.mxu1 %v211_v27  ;;  %v704_v46 = vand.u32 4294901760, %v703_v42  ;;  %v723_v52 = vand.u32 4294901760, %v2795_v49  ;;  %v718_v53 = vand.u32 4294901760, %v717_v51  ;;  %v2875_v27 = vand.u32 4294901760, %v1084_v24 }
  0x41   :  { %2243 = vmatmul.mubr.f32.vlgmr.msra.gmra.mxu0 %v169_v29  ;;  %2249 = vmatprep.subr.mxu1 %v2625_v0  ;;  %v2873_v26 = vsub.f32 %v1085_v21, %v2867_v23 }
  0x42   :  { %2257 = vmatpush3.msra.mxu0 %v201_v11  ;;  %2250 = vmatpush3.msra.mxu1 %v218_v30  ;;  %v724_v54 = vsub.f32 %v2795_v49, %v723_v52 }
  0x43   :  { %2258 = vmatprep.subr.mxu0 %v2625_v0  ;;  %2251 = vmatprep.subr.mxu1 %v2625_v0  ;;  %v1211_v30 = vand.u32 4294901760, %v2873_v26 }
  0x44   :  { %2259 = vmatpush3.msra.mxu0 %v208_v13  ;;  %2252 = vmatpush3.msra.mxu1 %v225_v31  ;;  %v725_v55 = vand.u32 4294901760, %v724_v54  ;;  %v2884_v31 = vsub.f32 %v1084_v24, %v2875_v27 }
  0x45   :  { %2260 = vmatprep.subr.mxu0 %v2625_v0  ;;  %2254 = vmatmul.mubr.f32.vlgmr.msra.gmra.mxu1 %v2706_v12  ;;  %v1212_v34 = vsub.f32 %v2873_v26, %v1211_v30 }
  0x46   :  { %2261 = vmatpush3.msra.mxu0 %v215_v14  ;;  %2267 = vmatprep.subr.mxu1 %v2625_v0 }
  0x47   :  { %2262 = vmatprep.subr.mxu0 %v2625_v0  ;;  %2268 = vmatpush3.msra.mxu1 %v2695_v4  ;;  %v1213_v37 = vand.u32 4294901760, %v1212_v34 }
  0x48   :  { %2263 = vmatpush3.msra.mxu0 %v222_v15  ;;  %2264 = vmatprep.mubr.msk.f32.mxu0 %vm2626_vm0, %v2625_v0 }
  0x49   :  { %2269 = vmatprep.subr.mxu1 %v2625_v0  ;;  %2278 = vmatprep.subr.mxu0 %v2625_v0 }
  0x4a   :  { %2265 = vmatmul.mubr.f32.vlgmr.msra.gmra.mxu0 %v166_v17  ;;  %2270 = vmatpush3.msra.mxu1 %v2697_v5 }
  0x4b   :  { %2279 = vmatpush3.msra.mxu0 %v202_v16  ;;  %2271 = vmatprep.subr.mxu1 %v2625_v0 }
  0x4c   :  { %2280 = vmatprep.subr.mxu0 %v2625_v0  ;;  %2272 = vmatpush3.msra.mxu1 %v2699_v6 }
  0x4d   :  { %2281 = vmatpush3.msra.mxu0 %v209_v18  ;;  %2273 = vmatprep.subr.mxu1 %v2625_v0 }
  0x4e   :  { %2282 = vmatprep.subr.mxu0 %v2625_v0  ;;  %2274 = vmatpush3.msra.mxu1 %v2701_v9 }
  0x4f   :  { %2275 = vmatprep.mubr.msk.f32.mxu1 %vm2626_vm0, %v2625_v0  ;;  %2283 = vmatpush3.msra.mxu0 %v216_v19  ;;  %v1086_v19 = vld [vmem:[#allocation7 + $0x38] sm:$0xff] }
  0x50   :  { %2276 = vmatmul.mubr.f32.vlgmr.msra.gmra.mxu1 %v167_v22  ;;  %2284 = vmatprep.subr.mxu0 %v2625_v0 }
  0x51   :  { %2289 = vmatprep.subr.mxu1 %v2625_v0  ;;  %2285 = vmatpush3.msra.mxu0 %v223_v20  ;;  %v2862_v20 = vand.u32 4294901760, %v1086_v19 }
  0x52   :  { %2286 = vmatprep.mubr.msk.f32.mxu0 %vm2626_vm0, %v2625_v0  ;;  %2290 = vmatpush3.msra.mxu1 %v2695_v4 }
  0x53   :  { %2287 = vmatmul.mubr.f32.vlgmr.msra.gmra.mxu0 %v2706_v12  ;;  %2291 = vmatprep.subr.mxu1 %v2625_v0  ;;  %v2865_v22 = vsub.f32 %v1086_v19, %v2862_v20 }
  0x54   :  { %2297 = vmatprep.mubr.msk.f32.mxu1 %vm2626_vm0, %v2625_v0  ;;  %2292 = vmatpush3.msra.mxu1 %v2697_v5 }
  0x55   :  { %2300 = vmatprep.subr.mxu0 %v2625_v0  ;;  %2293 = vmatprep.subr.mxu1 %v2625_v0  ;;  %v1204_v25 = vand.u32 4294901760, %v2865_v22 }
  0x56   :  { %2308 = vmatprep.mubr.msk.f32.mxu0 %vm2626_vm0, %v2625_v0  ;;  %2294 = vmatpush3.msra.mxu1 %v2699_v6 }
  0x57   :  { %2295 = vmatprep.subr.mxu1 %v2625_v0  ;;  %2301 = vmatpush3.msra.mxu0 %v2762_v33  ;;  %v1205_v29 = vsub.f32 %v2865_v22, %v1204_v25 }
  0x58   :  { %2296 = vmatpush3.msra.mxu1 %v2701_v9  ;;  %2302 = vmatprep.subr.mxu0 %v2625_v0 }
  0x59   :  { %2298 = vmatmul.mubr.f32.vlgmr.msra.gmra.mxu1 %v2706_v12  ;;  %2311 = vmatprep.subr.mxu1 %v2625_v0 }
  0x5a   :  { %2319 = vmatprep.mubr.msk.f32.mxu1 %vm2626_vm0, %v2625_v0  ;;  %2303 = vmatpush3.msra.mxu0 %v2767_v36 }
  0x5b   :  { %2304 = vmatprep.subr.mxu0 %v2625_v0  ;;  %2312 = vmatpush3.msra.mxu1 %v704_v46 }
  0x5c   :  { %2305 = vmatpush3.msra.mxu0 %v2775_v40  ;;  %2313 = vmatprep.subr.mxu1 %v2625_v0 }
  0x5d   :  { %2306 = vmatprep.subr.mxu0 %v2625_v0  ;;  %2314 = vmatpush3.msra.mxu1 %v711_v50 }
  0x5e   :  { %2307 = vmatpush3.msra.mxu0 %v2786_v45  ;;  %2315 = vmatprep.subr.mxu1 %v2625_v0 }
  0x5f   :  { %2322 = vmatprep.subr.mxu0 %v2625_v0  ;;  %2316 = vmatpush3.msra.mxu1 %v718_v53 }
  0x60   :  { %2317 = vmatprep.subr.mxu1 %v2625_v0 }
  0x61   :  { %2318 = vmatpush3.msra.mxu1 %v725_v55 }
  0x62   :  { %2333 = vmatprep.subr.mxu1 %v2625_v0 }
 0x101   :  { %v171_v56 = vpop.f32.mrf.mxu0 }
 0x102   :  { %v172_v62 = vadd.f32 %v2108_v59, %v171_v56 }
 0x103   :  { %v2244_v57 = vpop.f32.mrf.mxu0 }
 0x105   :  { %v262_v58 = vpop.f32.mrf.mxu1 }
 0x106   :  { %v263_v1 = vadd.f32 %v262_v58, %v172_v62 }
 0x107   :  { %v2255_v60 = vpop.f32.mrf.mxu1 }
 0x10a   :  { %v342_v61 = vpop.f32.mrf.mxu0 }
 0x10b   :  { %v343_v4 = vadd.f32 %v342_v61, %v263_v1 }
 0x10c   :  { %v2266_v63 = vpop.f32.mrf.mxu0 }
 0x110   :  { %v419_v2 = vpop.f32.mrf.mxu1 }
 0x111   :  { %v420_v6 = vadd.f32 %v419_v2, %v343_v4 }
 0x112   :  { %v2277_v3 = vpop.f32.mrf.mxu1 }
 0x113   :  { %v502_v5 = vpop.f32.mrf.mxu0 }
 0x114   :  { %v503_v8 = vadd.f32 %v502_v5, %v420_v6  ;;  %v1587_v6 = vld [vmem:[#allocation8 + $0x18] sm:$0xff] }
 0x115   :  { %v2288_v7 = vpop.f32.mrf.mxu0 }
 0x116   :  { %v2962_v7 = vand.u32 4294901760, %v1587_v6 }
 0x119   :  { %v577_v9 = vpop.f32.mrf.mxu1 }
 0x11a   :  { %v578_v10 = vadd.f32 %v577_v9, %v503_v8  ;;  %v1586_v8 = vld [vmem:[#allocation8 + $0x10] sm:$0xff]  ;;  %v2965_v9 = vsub.f32 %v1587_v6, %v2962_v7 }
 0x11b   :  { %v2299_v11 = vpop.f32.mrf.mxu1 }
 0x11c   :  { %v581_v12 = vmax.f32 %v578_v10, 0.0  ;;  %v2967_v10 = vand.u32 4294901760, %v1586_v8  ;;  %v1585_v11 = vld [vmem:[#allocation8 + $0x8] sm:$0xff] }
 0x11e   :  { %v594_v13 = vsel %vm92_vm1, %v581_v12, 0  ;;  %v1704_v12 = vand.u32 4294901760, %v2965_v9 }
 0x11f   :  { %v665_v14 = vand.u32 4294901760, %v594_v13 }
 0x121   :  { %v666_v15 = vsub.f32 %v594_v13, %v665_v14  ;;  %2320 = vmatmul.mubr.f32.vlgmr.msra.gmra.mxu1 %v665_v14  ;;  %v2973_v13 = vsub.f32 %v1586_v8, %v2967_v10 }
 0x122   :  { %2334 = vmatpush3.msra.mxu1 %v2762_v33  ;;  %2341 = vmatprep.mubr.msk.f32.mxu1 %vm2626_vm0, %v2625_v0 }
 0x123   :  { %2335 = vmatprep.subr.mxu1 %v2625_v0  ;;  %v667_v16 = vand.u32 4294901760, %v666_v15 }
 0x124   :  { %2336 = vmatpush3.msra.mxu1 %v2767_v36 }
 0x125   :  { %2337 = vmatprep.subr.mxu1 %v2625_v0  ;;  %v668_v17 = vsub.f32 %v666_v15, %v667_v16 }
 0x126   :  { %2338 = vmatpush3.msra.mxu1 %v2775_v40 }
 0x127   :  { %2339 = vmatprep.subr.mxu1 %v2625_v0  ;;  %v669_v18 = vand.u32 4294901760, %v668_v17  ;;  %v1711_v17 = vand.u32 4294901760, %v2973_v13 }
 0x128   :  { %2340 = vmatpush3.msra.mxu1 %v2786_v45 }
 0x129   :  { %2342 = vmatmul.mubr.f32.vlgmr.msra.gmra.mxu1 %v667_v16  ;;  %2355 = vmatprep.subr.mxu1 %v2625_v0  ;;  %v1705_v16 = vsub.f32 %v2965_v9, %v1704_v12  ;;  %v1712_v21 = vsub.f32 %v2973_v13, %v1711_v17 }
 0x12a   :  { %2309 = vmatmul.mubr.f32.vlgmr.msra.gmra.mxu0 %v669_v18  ;;  %2356 = vmatpush3.msra.mxu1 %v2762_v33  ;;  %v1206_v33 = vand.u32 4294901760, %v1205_v29 }
 0x12b   :  { %2323 = vmatpush3.msra.mxu0 %v2765_v35  ;;  %2357 = vmatprep.subr.mxu1 %v2625_v0  ;;  %v1218_v35 = vand.u32 4294901760, %v2884_v31  ;;  %v1713_v24 = vand.u32 4294901760, %v1712_v21 }
 0x12c   :  { %2324 = vmatprep.subr.mxu0 %v2625_v0  ;;  %2358 = vmatpush3.msra.mxu1 %v2767_v36  ;;  %v2895_v36 = vsub.f32 %v1083_v28, %v2886_v32 }
 0x12d   :  { %2325 = vmatpush3.msra.mxu0 %v2773_v39  ;;  %2359 = vmatprep.subr.mxu1 %v2625_v0 }
 0x12e   :  { %2326 = vmatprep.subr.mxu0 %v2625_v0  ;;  %2360 = vmatpush3.msra.mxu1 %v2775_v40  ;;  %v1225_v39 = vand.u32 4294901760, %v2895_v36 }
 0x12f   :  { %2327 = vmatpush3.msra.mxu0 %v2784_v44  ;;  %2361 = vmatprep.subr.mxu1 %v2625_v0 }
 0x130   :  { %2328 = vmatprep.subr.mxu0 %v2625_v0  ;;  %2330 = vmatprep.mubr.msk.f32.mxu0 %vm2626_vm0, %v2625_v0  ;;  %v1226_v41 = vsub.f32 %v2895_v36, %v1225_v39 }
 0x131   :  { %2329 = vmatpush3.msra.mxu0 %v2795_v49  ;;  %2362 = vmatpush3.msra.mxu1 %v2786_v45  ;;  %v2109_v49 = vld [vmem:[%s3066_s4] ss:$0 sm:$0xff] }
 0x132   :  { %2363 = vmatprep.mubr.msk.f32.mxu1 %vm2626_vm0, %v2625_v0  ;;  %2331 = vmatmul.mubr.f32.vlgmr.msra.gmra.mxu0 %v666_v15  ;;  %v1227_v42 = vand.u32 4294901760, %v1226_v41  ;;  %v1584_v15 = vld [vmem:[#allocation8] sm:$0xff] }
 0x133   :  { %2344 = vmatprep.subr.mxu0 %v2625_v0  ;;  %2364 = vmatmul.mubr.f32.vlgmr.msra.gmra.mxu1 %v665_v14  ;;  %v2986_v19 = vand.u32 4294901760, %v1584_v15 }
 0x134   :  { %2345 = vmatpush3.msra.mxu0 %v702_v38  ;;  %2352 = vmatprep.mubr.msk.f32.mxu0 %vm2626_vm0, %v2625_v0  ;;  %v1219_v38 = vsub.f32 %v2884_v31, %v1218_v35 }
 0x135   :  { %2346 = vmatprep.subr.mxu0 %v2625_v0  ;;  %2377 = vmatprep.subr.mxu1 %v2625_v0 }
 0x136   :  { %2347 = vmatpush3.msra.mxu0 %v709_v43  ;;  %2385 = vmatprep.mubr.msk.f32.mxu1 %vm2626_vm0, %v2625_v0  ;;  %v1220_v40 = vand.u32 4294901760, %v1219_v38 }
 0x137   :  { %2348 = vmatprep.subr.mxu0 %v2625_v0  ;;  %2378 = vmatpush3.msra.mxu1 %v1206_v33 }
 0x138   :  { %2349 = vmatpush3.msra.mxu0 %v716_v48  ;;  %2379 = vmatprep.subr.mxu1 %v2625_v0 }
 0x139   :  { %2350 = vmatprep.subr.mxu0 %v2625_v0  ;;  %2380 = vmatpush3.msra.mxu1 %v1213_v37 }
 0x13a   :  { %2351 = vmatpush3.msra.mxu0 %v723_v52  ;;  %2381 = vmatprep.subr.mxu1 %v2625_v0 }
 0x13b   :  { %2353 = vmatmul.mubr.f32.vlgmr.msra.gmra.mxu0 %v665_v14  ;;  %2366 = vmatprep.subr.mxu0 %v2625_v0  ;;  %v2975_v14 = vand.u32 4294901760, %v1585_v11 }
 0x13c   :  { %2374 = vmatprep.mubr.msk.f32.mxu0 %vm2626_vm0, %v2625_v0  ;;  %2367 = vmatpush3.msra.mxu0 %v2862_v20 }
 0x13d   :  { %2368 = vmatprep.subr.mxu0 %v2625_v0  ;;  %2382 = vmatpush3.msra.mxu1 %v1220_v40  ;;  %v2984_v18 = vsub.f32 %v1585_v11, %v2975_v14 }
 0x13e   :  { %2369 = vmatpush3.msra.mxu0 %v2867_v23  ;;  %2383 = vmatprep.subr.mxu1 %v2625_v0 }
 0x13f   :  { %2370 = vmatprep.subr.mxu0 %v2625_v0  ;;  %2384 = vmatpush3.msra.mxu1 %v1227_v42 }
 0x140   :  { %2371 = vmatpush3.msra.mxu0 %v2875_v27  ;;  %2399 = vmatprep.subr.mxu1 %v2625_v0 }
 0x141   :  { %2372 = vmatprep.subr.mxu0 %v2625_v0 }
 0x142   :  { %2373 = vmatpush3.msra.mxu0 %v2886_v32 }
 0x143   :  { %2388 = vmatprep.subr.mxu0 %v2625_v0 }
 0x1e1   :  { %v762_v43 = vpop.f32.mrf.mxu1 }
 0x1e3   :  { %v2321_v44 = vpop.f32.mrf.mxu1 }
 0x1e9   :  { %v919_v45 = vpop.f32.mrf.mxu1 }
 0x1ea   :  { %v671_v46 = vpop.f32.mrf.mxu0 }
 0x1eb   :  { %v2343_v47 = vpop.f32.mrf.mxu1  ;;  %v672_v50 = vadd.f32 %v2109_v49, %v671_v46 }
 0x1ec   :  { %v2310_v48 = vpop.f32.mrf.mxu0 }
 0x1ed   :  { %v763_v53 = vadd.f32 %v762_v43, %v672_v50 }
 0x1f2   :  { %v842_v51 = vpop.f32.mrf.mxu0 }
 0x1f3   :  { %v1077_v52 = vpop.f32.mrf.mxu1  ;;  %v843_v56 = vadd.f32 %v842_v51, %v763_v53 }
 0x1f4   :  { %v2332_v54 = vpop.f32.mrf.mxu0 }
 0x1f5   :  { %v2365_v55 = vpop.f32.mrf.mxu1  ;;  %v920_v57 = vadd.f32 %v919_v45, %v843_v56 }
 0x1fb   :  { %v1002_v58 = vpop.f32.mrf.mxu0 }
 0x1fc   :  { %v1003_v59 = vadd.f32 %v1002_v58, %v920_v57 }
 0x1fd   :  { %v2354_v60 = vpop.f32.mrf.mxu0 }
 0x1fe   :  { %v1078_v61 = vadd.f32 %v1077_v52, %v1003_v59 }
 0x200   :  { %v1081_v62 = vmax.f32 %v1078_v61, 0.0 }
 0x202   :  { %v1096_v63 = vsel %vm92_vm1, %v1081_v62, 0  ;;  %v2112_v62 = vld [vmem:[%s3068_s6] ss:$0 sm:$0xff]  ;;  %s2097_s6 = sshll.u32 %s2627_s25, 4  ;;  %s2098_s6 = int_to_ptr.vmem [resolvable:$true] %s2097_s6 }
 0x203   :  { %v1167_v1 = vand.u32 4294901760, %v1096_v63  ;;  %s2591_s26 = scalar_lea.vmem %s2098_s6, 256  ;;  %p2596_p7 = scmp.lt.s32.totalorder %s2098_s6, %s2098_s6 }
 0x204   :  { %p2592_p6 = scmp.ne.s32.totalorder %s2098_s6, %s2591_s26  ;;  %p2597_p8 = scmp.lt.s32.totalorder %s2591_s26, %s2591_s26 }
 0x205   :  { %v1168_v2 = vsub.f32 %v1096_v63, %v1167_v1  ;;  %2386 = vmatmul.mubr.f32.vlgmr.msra.gmra.mxu1 %v1167_v1 }
 0x206   :  { %2400 = vmatpush3.msra.mxu1 %v2862_v20  ;;  %2407 = vmatprep.mubr.msk.f32.mxu1 %vm2626_vm0, %v2625_v0  ;;  %p2598_p9 = por %p2597_p8, %p2596_p7 }
 0x207   :  { %2401 = vmatprep.subr.mxu1 %v2625_v0  ;;  %v1169_v3 = vand.u32 4294901760, %v1168_v2 }
 0x208   :  { %2402 = vmatpush3.msra.mxu1 %v2867_v23  ;;  %p2599_p10 = pnand %p2598_p9, %p2592_p6 }
 0x209   :  { %2403 = vmatprep.subr.mxu1 %v2625_v0  ;;  %v1170_v4 = vsub.f32 %v1168_v2, %v1169_v3 }
 0x20a   :  { %2404 = vmatpush3.msra.mxu1 %v2875_v27 }
 0x20b   :  { %2405 = vmatprep.subr.mxu1 %v2625_v0  ;;  %v1171_v5 = vand.u32 4294901760, %v1170_v4 }
 0x20c   :  { %2406 = vmatpush3.msra.mxu1 %v2886_v32 }
 0x20d   :  { %2408 = vmatmul.mubr.f32.vlgmr.msra.gmra.mxu1 %v1169_v3  ;;  %2421 = vmatprep.subr.mxu1 %v2625_v0 }
 0x20e   :  { %2375 = vmatmul.mubr.f32.vlgmr.msra.gmra.mxu0 %v1171_v5  ;;  %2422 = vmatpush3.msra.mxu1 %v2862_v20  ;;  %v1706_v20 = vand.u32 4294901760, %v1705_v16 }
 0x20f   :  { %2389 = vmatpush3.msra.mxu0 %v2865_v22  ;;  %2423 = vmatprep.subr.mxu1 %v2625_v0  ;;  %v1718_v22 = vand.u32 4294901760, %v2984_v18 }
 0x210   :  { %2390 = vmatprep.subr.mxu0 %v2625_v0  ;;  %2424 = vmatpush3.msra.mxu1 %v2867_v23  ;;  %v2995_v23 = vsub.f32 %v1584_v15, %v2986_v19 }
 0x211   :  { %2391 = vmatpush3.msra.mxu0 %v2873_v26  ;;  %2425 = vmatprep.subr.mxu1 %v2625_v0 }
 0x212   :  { %2392 = vmatprep.subr.mxu0 %v2625_v0  ;;  %2426 = vmatpush3.msra.mxu1 %v2875_v27  ;;  %v1725_v26 = vand.u32 4294901760, %v2995_v23 }
 0x213   :  { %2393 = vmatpush3.msra.mxu0 %v2884_v31  ;;  %2427 = vmatprep.subr.mxu1 %v2625_v0 }
 0x214   :  { %2394 = vmatprep.subr.mxu0 %v2625_v0  ;;  %2396 = vmatprep.mubr.msk.f32.mxu0 %vm2626_vm0, %v2625_v0  ;;  %v1726_v28 = vsub.f32 %v2995_v23, %v1725_v26 }
 0x215   :  { %2395 = vmatpush3.msra.mxu0 %v2895_v36  ;;  %2428 = vmatpush3.msra.mxu1 %v2886_v32  ;;  %v2111_v36 = vld [vmem:[%s3066_s4 + $0x1] ss:$0 sm:$0xff] }
 0x216   :  { %2429 = vmatprep.mubr.msk.f32.mxu1 %vm2626_vm0, %v2625_v0  ;;  %2397 = vmatmul.mubr.f32.vlgmr.msra.gmra.mxu0 %v1168_v2  ;;  %v1727_v29 = vand.u32 4294901760, %v1726_v28 }
 0x217   :  { %2410 = vmatprep.subr.mxu0 %v2625_v0  ;;  %2430 = vmatmul.mubr.f32.vlgmr.msra.gmra.mxu1 %v1167_v1 }
 0x218   :  { %2411 = vmatpush3.msra.mxu0 %v1204_v25  ;;  %2418 = vmatprep.mubr.msk.f32.mxu0 %vm2626_vm0, %v2625_v0  ;;  %v1719_v25 = vsub.f32 %v2984_v18, %v1718_v22 }
 0x219   :  { %2412 = vmatprep.subr.mxu0 %v2625_v0  ;;  %2443 = vmatprep.subr.mxu1 %v2625_v0 }
 0x21a   :  { %2413 = vmatpush3.msra.mxu0 %v1211_v30  ;;  %2451 = vmatprep.mubr.msk.f32.mxu1 %vm2626_vm0, %v2625_v0  ;;  %v1720_v27 = vand.u32 4294901760, %v1719_v25 }
 0x21b   :  { %2414 = vmatprep.subr.mxu0 %v2625_v0  ;;  %2444 = vmatpush3.msra.mxu1 %v1706_v20 }
 0x21c   :  { %2415 = vmatpush3.msra.mxu0 %v1218_v35  ;;  %2445 = vmatprep.subr.mxu1 %v2625_v0 }
 0x21d   :  { %2416 = vmatprep.subr.mxu0 %v2625_v0  ;;  %2446 = vmatpush3.msra.mxu1 %v1713_v24 }
 0x21e   :  { %2417 = vmatpush3.msra.mxu0 %v1225_v39  ;;  %2447 = vmatprep.subr.mxu1 %v2625_v0 }
 0x21f   :  { %2419 = vmatmul.mubr.f32.vlgmr.msra.gmra.mxu0 %v1167_v1  ;;  %2432 = vmatprep.subr.mxu0 %v2625_v0 }
 0x220   :  { %2440 = vmatprep.mubr.msk.f32.mxu0 %vm2626_vm0, %v2625_v0  ;;  %2433 = vmatpush3.msra.mxu0 %v2962_v7 }
 0x221   :  { %2434 = vmatprep.subr.mxu0 %v2625_v0  ;;  %2448 = vmatpush3.msra.mxu1 %v1720_v27 }
 0x222   :  { %2435 = vmatpush3.msra.mxu0 %v2967_v10  ;;  %2449 = vmatprep.subr.mxu1 %v2625_v0 }
 0x223   :  { %2436 = vmatprep.subr.mxu0 %v2625_v0  ;;  %2450 = vmatpush3.msra.mxu1 %v1727_v29 }
 0x224   :  { %2437 = vmatpush3.msra.mxu0 %v2975_v14  ;;  %2465 = vmatprep.subr.mxu1 %v2625_v0 }
 0x225   :  { %2438 = vmatprep.subr.mxu0 %v2625_v0 }
 0x226   :  { %2439 = vmatpush3.msra.mxu0 %v2986_v19 }
 0x227   :  { %2454 = vmatprep.subr.mxu0 %v2625_v0 }
 0x2c5   :  { %v1264_v30 = vpop.f32.mrf.mxu1 }
 0x2c7   :  { %v2387_v31 = vpop.f32.mrf.mxu1 }
 0x2cd   :  { %v1421_v32 = vpop.f32.mrf.mxu1 }
 0x2ce   :  { %v1173_v33 = vpop.f32.mrf.mxu0 }
 0x2cf   :  { %v2409_v34 = vpop.f32.mrf.mxu1  ;;  %v1174_v37 = vadd.f32 %v2111_v36, %v1173_v33 }
 0x2d0   :  { %v2376_v35 = vpop.f32.mrf.mxu0 }
 0x2d1   :  { %v1265_v40 = vadd.f32 %v1264_v30, %v1174_v37 }
 0x2d6   :  { %v1344_v38 = vpop.f32.mrf.mxu0 }
 0x2d7   :  { %v1579_v39 = vpop.f32.mrf.mxu1  ;;  %v1345_v43 = vadd.f32 %v1344_v38, %v1265_v40 }
 0x2d8   :  { %v2398_v41 = vpop.f32.mrf.mxu0 }
 0x2d9   :  { %v2431_v42 = vpop.f32.mrf.mxu1  ;;  %v1422_v44 = vadd.f32 %v1421_v32, %v1345_v43 }
 0x2df   :  { %v1504_v45 = vpop.f32.mrf.mxu0 }
 0x2e0   :  { %v1505_v46 = vadd.f32 %v1504_v45, %v1422_v44 }
 0x2e1   :  { %v2420_v47 = vpop.f32.mrf.mxu0 }
 0x2e2   :  { %v1580_v48 = vadd.f32 %v1579_v39, %v1505_v46 }
 0x2e4   :  { %v1583_v49 = vmax.f32 %v1580_v48, 0.0 }
 0x2e6   :  { %v1596_v50 = vsel %vm92_vm1, %v1583_v49, 0 }
 0x2e7   :  { %v1667_v51 = vand.u32 4294901760, %v1596_v50 }
 0x2e9   :  { %v1668_v52 = vsub.f32 %v1596_v50, %v1667_v51  ;;  %2452 = vmatmul.mubr.f32.vlgmr.msra.gmra.mxu1 %v1667_v51 }
 0x2ea   :  { %2466 = vmatpush3.msra.mxu1 %v2962_v7  ;;  %2473 = vmatprep.mubr.msk.f32.mxu1 %vm2626_vm0, %v2625_v0 }
 0x2eb   :  { %2467 = vmatprep.subr.mxu1 %v2625_v0  ;;  %v1669_v53 = vand.u32 4294901760, %v1668_v52 }
 0x2ec   :  { %2468 = vmatpush3.msra.mxu1 %v2967_v10 }
 0x2ed   :  { %2469 = vmatprep.subr.mxu1 %v2625_v0  ;;  %v1670_v54 = vsub.f32 %v1668_v52, %v1669_v53 }
 0x2ee   :  { %2470 = vmatpush3.msra.mxu1 %v2975_v14 }
 0x2ef   :  { %2471 = vmatprep.subr.mxu1 %v2625_v0  ;;  %v1671_v55 = vand.u32 4294901760, %v1670_v54 }
 0x2f0   :  { %2472 = vmatpush3.msra.mxu1 %v2986_v19 }
 0x2f1   :  { %2474 = vmatmul.mubr.f32.vlgmr.msra.gmra.mxu1 %v1669_v53  ;;  %2487 = vmatprep.subr.mxu1 %v2625_v0 }
 0x2f2   :  { %2441 = vmatmul.mubr.f32.vlgmr.msra.gmra.mxu0 %v1671_v55  ;;  %2488 = vmatpush3.msra.mxu1 %v2962_v7 }
 0x2f3   :  { %2455 = vmatpush3.msra.mxu0 %v2965_v9  ;;  %2489 = vmatprep.subr.mxu1 %v2625_v0 }
 0x2f4   :  { %2456 = vmatprep.subr.mxu0 %v2625_v0  ;;  %2490 = vmatpush3.msra.mxu1 %v2967_v10 }
 0x2f5   :  { %2457 = vmatpush3.msra.mxu0 %v2973_v13  ;;  %2491 = vmatprep.subr.mxu1 %v2625_v0 }
 0x2f6   :  { %2458 = vmatprep.subr.mxu0 %v2625_v0  ;;  %2492 = vmatpush3.msra.mxu1 %v2975_v14 }
 0x2f7   :  { %2459 = vmatpush3.msra.mxu0 %v2984_v18  ;;  %2493 = vmatprep.subr.mxu1 %v2625_v0 }
 0x2f8   :  { %2460 = vmatprep.subr.mxu0 %v2625_v0  ;;  %2462 = vmatprep.mubr.msk.f32.mxu0 %vm2626_vm0, %v2625_v0 }
 0x2f9   :  { %2461 = vmatpush3.msra.mxu0 %v2995_v23  ;;  %2494 = vmatpush3.msra.mxu1 %v2986_v19 }
 0x2fa   :  { %2495 = vmatprep.mubr.msk.f32.mxu1 %vm2626_vm0, %v2625_v0  ;;  %2463 = vmatmul.mubr.f32.vlgmr.msra.gmra.mxu0 %v1668_v52 }
 0x2fb   :  { %2476 = vmatprep.subr.mxu0 %v2625_v0  ;;  %2496 = vmatmul.mubr.f32.vlgmr.msra.gmra.mxu1 %v1667_v51 }
 0x2fc   :  { %2477 = vmatpush3.msra.mxu0 %v1704_v12  ;;  %2484 = vmatprep.mubr.msk.f32.mxu0 %vm2626_vm0, %v2625_v0 }
 0x2fd   :  { %2478 = vmatprep.subr.mxu0 %v2625_v0 }
 0x2fe   :  { %2479 = vmatpush3.msra.mxu0 %v1711_v17 }
 0x2ff   :  { %2480 = vmatprep.subr.mxu0 %v2625_v0 }
 0x300   :  { %2481 = vmatpush3.msra.mxu0 %v1718_v22 }
 0x301   :  { %2482 = vmatprep.subr.mxu0 %v2625_v0 }
 0x302   :  { %2483 = vmatpush3.msra.mxu0 %v1725_v26 }
 0x303   :  { %2485 = vmatmul.mubr.f32.vlgmr.msra.gmra.mxu0 %v1667_v51 }
 0x3a9   :  { %v1764_v56 = vpop.f32.mrf.mxu1 }
 0x3ab   :  { %v2453_v57 = vpop.f32.mrf.mxu1 }
 0x3b1   :  { %v1921_v58 = vpop.f32.mrf.mxu1 }
 0x3b2   :  { %v1673_v59 = vpop.f32.mrf.mxu0 }
 0x3b3   :  { %v2475_v60 = vpop.f32.mrf.mxu1  ;;  %v1674_v63 = vadd.f32 %v2112_v62, %v1673_v59 }
 0x3b4   :  { %v2442_v61 = vpop.f32.mrf.mxu0 }
 0x3b5   :  { %v1765_v3 = vadd.f32 %v1764_v56, %v1674_v63 }
 0x3ba   :  { %v1844_v1 = vpop.f32.mrf.mxu0 }
 0x3bb   :  { %v2079_v2 = vpop.f32.mrf.mxu1  ;;  %v1845_v5 = vadd.f32 %v1844_v1, %v1765_v3 }
 0x3bc   :  { %v2464_v4 = vpop.f32.mrf.mxu0 }
 0x3bd   :  { %v2497_v0 = vpop.f32.mrf.mxu1  ;;  %v1922_v6 = vadd.f32 %v1921_v58, %v1845_v5 }
 0x3c3   :  { %v2004_v7 = vpop.f32.mrf.mxu0 }
 0x3c4   :  { %v2005_v8 = vadd.f32 %v2004_v7, %v1922_v6 }
 0x3c5   :  { %v2486_v9 = vpop.f32.mrf.mxu0 }
 0x3c6   :  { %v2080_v10 = vadd.f32 %v2079_v2, %v2005_v8 }
 0x3c8   :  { %v2113_v11 = vmul.f32 -1.442695, %v2080_v10  ;;  %2089 = vst [vmem:[#allocation10] sm:$0xff] %v2080_v10 }
 0x3ca   :  { %2507 = vpow2.f32 %v2113_v11 }
 0x3d7   :  { %v2508_v12 = vpop.eup %2507 }
 0x3d8   :  { %v2086_v13 = vadd.f32 1.0, %v2508_v12 }
 0x3da   :  { %2509 = vrcp.f32 %v2086_v13 }
 0x3e7   :  { %v2510_v14 = vpop.eup %2509 }
 0x3e8   :  { %2090 = vst [vmem:[#allocation10 + $0x8] sm:$0xff] %v2510_v14 }
 0x3e9   :  { %2602 = shalt.err (!%p2599_p10)
}
 0x3ea   :  { %2100 = dma.vmem_to_hbm [thread:$0]  %s2098_s6, 256, %s3069_s7, [#allocation4]  }
 0x3eb   :  { %2617 = dma.done.wait [#allocation4], 256  }
 0x3ec   :  { %2618 = vsyncadd [#allocation4], 4294967040 }
 0x3ed   :  { %2104 = vsyncpa [#allocation3], 1 }
 0x3ee   :  { %2105 = vsyncpa [#allocation6], 1 }
 0x3ef   :  { %2106 = vsyncpa [#allocation9], 1 }
 0x3f0   :  { %2107 = vsyncpa [#allocation4], 1 }

</bundles_post_ra>
